<compile_context>
chip_gen: v5e
topology: v5e:2x2
jax: 0.10.0
libtpu: 0.0.40
codegen_flags: <defaults>
</compile_context>

<pallas_src>
import jax
import jax.numpy as jnp
from jax import lax
from jax.experimental import pallas as pl
from jax.experimental.pallas import tpu as pltpu

# ----------------------------- model config (small, synthetic) ---------------
VOCAB_SIZE = 512     # synthetic (real module reads it from a tokenizer file)
D_MODEL    = 128     # scaled-down d_model (real module uses 768)
MAXLEN     = 16
N_SEGMENTS = 2
LN_EPS     = 1e-5    # torch.nn.LayerNorm default


def _embedding_kernel(ids_ref,        # SMEM (B*S,) int32   scalar-prefetched token ids
                      tok_ref,        # VMEM (V, D) f32     token table (resident)
                      seg_ref,        # VMEM (TS, 1) int32  segment ids for this tile
                      pos_ref,        # VMEM (TS, D) f32    pre-tiled positional rows
                      segtab_ref,     # VMEM (n_seg, D) f32 segment embedding table
                      gamma_ref,      # VMEM (1, D) f32     LayerNorm weight
                      beta_ref,       # VMEM (1, D) f32     LayerNorm bias
                      out_ref,        # VMEM (TS, D) f32    output tile
                      tok_scratch):   # scratch VMEM (TS, D) f32 gathered token rows
    ts, d = out_ref.shape
    base = pl.program_id(0) * ts      # first flattened row of this tile

    # ---- token embedding: dynamic VMEM row gather (no HBM DMA, no MXU) ----
    def _gather_row(r, carry):
        tok_id = ids_ref[base + r]                                  # SMEM scalar
        tok_scratch[pl.ds(r, 1), :] = tok_ref[pl.ds(tok_id, 1), :]  # VMEM -> VMEM row copy
        return carry

    lax.fori_loop(0, ts, _gather_row, 0)
    tok_e = tok_scratch[...]                                        # (TS, D)

    # ---- positional embedding: pre-tiled rows, broadcast add --------------
    pos_e = pos_ref[...]                                            # (TS, D)

    # ---- segment embedding -------------------------------------------------
    n_seg = segtab_ref.shape[0]
    if n_seg == 2:
        seg_f = seg_ref[...].astype(jnp.float32)                    # (TS, 1) in {0., 1.}
        seg_e = segtab_ref[0:1, :] + seg_f * (segtab_ref[1:2, :] - segtab_ref[0:1, :])
    else:
        seg_i = seg_ref[...]                                        # int32 compare
        seg_e = jnp.zeros((ts, d), jnp.float32)
        for g in range(n_seg):
            seg_e = seg_e + (seg_i == g).astype(jnp.float32) * segtab_ref[g:g + 1, :]

    emb = tok_e + pos_e + seg_e                                     # (TS, D)

    # ---- LayerNorm over d_model (two-pass f32 stats, rsqrt on EUP) --------
    inv_d = 1.0 / d
    mean = jnp.sum(emb, axis=-1, keepdims=True) * inv_d
    centered = emb - mean
    var = jnp.sum(centered * centered, axis=-1, keepdims=True) * inv_d
    inv_std = lax.rsqrt(var + LN_EPS)
    out_ref[...] = centered * inv_std * gamma_ref[...] + beta_ref[...]


def _choose_seqs_per_tile(b, s, rows_target=512):
    """Largest T dividing B with T*S <= rows_target, keeping grid length >= 2."""
    best = 1
    for t in range(1, b + 1):
        if b % t:
            continue
        if t * s > rows_target:
            continue
        if b >= 2 and (b // t) < 2:      # keep >= 2 grid steps for v7x's 2 TCs
            continue
        best = t
    return best


def embedding_forward(x, seg, tok_tab, pos_tab, seg_tab, gamma, beta,
                      rows_per_tile=512):
    """x, seg: (B, S) int. Returns (B, S, D) float32."""
    b, s = x.shape
    v, d = tok_tab.shape
    n_seg = seg_tab.shape[0]
    bs = b * s

    t = _choose_seqs_per_tile(b, s, rows_per_tile)   # sequences per grid tile
    ts = t * s                                       # rows per tile
    grid = (b // t,)

    ids_flat = x.reshape(bs).astype(jnp.int32)                 # scalar prefetch (SMEM)
    seg_col = seg.reshape(bs, 1).astype(jnp.int32)             # per-row segment id
    pos_block = jnp.tile(pos_tab[:s].astype(jnp.float32), (t, 1))   # (TS, D)
    gamma2 = gamma.reshape(1, d).astype(jnp.float32)
    beta2 = beta.reshape(1, d).astype(jnp.float32)

    grid_spec = pltpu.PrefetchScalarGridSpec(
        num_scalar_prefetch=1,
        grid=grid,
        in_specs=[
            pl.BlockSpec((v, d), lambda i, ids: (0, 0)),        # token table: VMEM-resident
            pl.BlockSpec((ts, 1), lambda i, ids: (i, 0)),       # seg ids for this tile
            pl.BlockSpec((ts, d), lambda i, ids: (0, 0)),       # pre-tiled pos rows
            pl.BlockSpec((n_seg, d), lambda i, ids: (0, 0)),    # seg table
            pl.BlockSpec((1, d), lambda i, ids: (0, 0)),        # gamma
            pl.BlockSpec((1, d), lambda i, ids: (0, 0)),        # beta
        ],
        out_specs=pl.BlockSpec((ts, d), lambda i, ids: (i, 0)), # lane-dense output blocks
        scratch_shapes=[
            pltpu.VMEM((ts, d), jnp.float32),                   # gathered token rows
        ],
    )

    out = pl.pallas_call(
        _embedding_kernel,
        out_shape=jax.ShapeDtypeStruct((bs, d), jnp.float32),
        grid_spec=grid_spec,
        compiler_params=pltpu.CompilerParams(
            dimension_semantics=("parallel",)),                 # shard tiles across TCs
    )(ids_flat, tok_tab.astype(jnp.float32), seg_col, pos_block,
      seg_tab.astype(jnp.float32), gamma2, beta2)
    return out.reshape(b, s, d)


def _reference(x, seg, tok_tab, pos_tab, seg_tab, gamma, beta):
    s = x.shape[1]
    emb = tok_tab[x] + pos_tab[jnp.arange(s)][None, :, :] + seg_tab[seg]
    mean = emb.mean(-1, keepdims=True)
    var = ((emb - mean) ** 2).mean(-1, keepdims=True)
    return (emb - mean) / jnp.sqrt(var + LN_EPS) * gamma + beta


if __name__ == "__main__":
    key = jax.random.PRNGKey(0)
    k_tok, k_pos, k_seg, k_ids, k_sid = jax.random.split(key, 5)

    # Parameters (deterministic init): nn.Embedding ~ N(0,1); LayerNorm w=1, b=0.
    tok_tab = jax.random.normal(k_tok, (VOCAB_SIZE, D_MODEL), jnp.float32)
    pos_tab = jax.random.normal(k_pos, (MAXLEN, D_MODEL), jnp.float32)
    seg_tab = jax.random.normal(k_seg, (N_SEGMENTS, D_MODEL), jnp.float32)
    gamma = jnp.ones((D_MODEL,), jnp.float32)
    beta = jnp.zeros((D_MODEL,), jnp.float32)

    # Small example inputs: batch=2, seq=8.
    B, S = 2, 8
    x = jax.random.randint(k_ids, (B, S), 0, VOCAB_SIZE, dtype=jnp.int32)
    seg = jax.random.randint(k_sid, (B, S), 0, N_SEGMENTS, dtype=jnp.int32)

    out = embedding_forward(x, seg, tok_tab, pos_tab, seg_tab, gamma, beta)
    out = jax.block_until_ready(out)

    ref = _reference(x, seg, tok_tab, pos_tab, seg_tab, gamma, beta)
    assert out.shape == (B, S, D_MODEL)
    assert jnp.allclose(out, ref, atol=1e-4, rtol=1e-4)
    print("KERNEL_OK")
</pallas_src>

<mosaic_0001>
module attributes {stable_mosaic.version = 11 : i64} {
  func.func @_embedding_kernel(%arg0: i32, %arg1: memref<16xi32, #tpu.memory_space<smem>>, %arg2: memref<512x128xf32, #tpu.memory_space<vmem>>, %arg3: memref<8x1xi32, #tpu.memory_space<vmem>>, %arg4: memref<8x128xf32, #tpu.memory_space<vmem>>, %arg5: memref<2x128xf32, #tpu.memory_space<vmem>>, %arg6: memref<1x128xf32, #tpu.memory_space<vmem>>, %arg7: memref<1x128xf32, #tpu.memory_space<vmem>>, %arg8: memref<8x128xf32, #tpu.memory_space<vmem>>, %arg9: memref<8x128xf32, #tpu.memory_space<vmem>>) attributes {dimension_semantics = [#tpu.dimension_semantics<parallel>], iteration_bounds = array<i64: 2>, scalar_prefetch = 1 : i64, scratch_operands = 1 : i64, tpu.core_type = #tpu.core_type<tc>, window_params = [{pipeline_mode = #tpu.pipeline_mode<synchronous>, transform_indices = @transform_0, window_bounds = array<i64: 512, 128>}, {transform_indices = @transform_1, window_bounds = array<i64: 8, 1>}, {pipeline_mode = #tpu.pipeline_mode<synchronous>, transform_indices = @transform_2, window_bounds = array<i64: 8, 128>}, {pipeline_mode = #tpu.pipeline_mode<synchronous>, transform_indices = @transform_3, window_bounds = array<i64: 2, 128>}, {pipeline_mode = #tpu.pipeline_mode<synchronous>, transform_indices = @transform_4, window_bounds = array<i64: 1, 128>}, {pipeline_mode = #tpu.pipeline_mode<synchronous>, transform_indices = @transform_5, window_bounds = array<i64: 1, 128>}, {transform_indices = @transform_6, window_bounds = array<i64: 8, 128>}]} {
    %c8_i32 = arith.constant 8 : i32
    %0 = arith.muli %arg0, %c8_i32 : i32
    %c0_i32 = arith.constant 0 : i32
    %c8_i32_0 = arith.constant 8 : i32
    %1 = arith.addi %c0_i32, %c8_i32_0 : i32
    %c1_i32 = arith.constant 1 : i32
    scf.for %arg10 = %c0_i32 to %1 step %c1_i32  : i32 {
      %40 = arith.addi %0, %arg10 : i32
      %41 = arith.index_cast %40 : i32 to index
      %42 = memref.load %arg1[%41] : memref<16xi32, #tpu.memory_space<smem>>
      %43 = arith.index_cast %42 : i32 to index
      %c0_22 = arith.constant 0 : index
      %44 = vector.load %arg2[%43, %c0_22] : memref<512x128xf32, #tpu.memory_space<vmem>>, vector<1x128xf32>
      %45 = arith.index_cast %arg10 : i32 to index
      %c0_23 = arith.constant 0 : index
      %46 = vector.load %arg9[%45, %c0_23] : memref<8x128xf32, #tpu.memory_space<vmem>>, vector<1x128xf32>
      tpu.vector_store %arg9[%45, %c0_23], %44 {strides = array<i32>} : memref<8x128xf32, #tpu.memory_space<vmem>>, vector<1x128xf32>,
    }
    %c8_i32_1 = arith.constant 8 : i32
    %c0 = arith.constant 0 : index
    %c0_2 = arith.constant 0 : index
    %2 = vector.load %arg9[%c0, %c0_2] : memref<8x128xf32, #tpu.memory_space<vmem>>, vector<8x128xf32>
    %c0_3 = arith.constant 0 : index
    %c0_4 = arith.constant 0 : index
    %3 = vector.load %arg4[%c0_3, %c0_4] : memref<8x128xf32, #tpu.memory_space<vmem>>, vector<8x128xf32>
    %c0_5 = arith.constant 0 : index
    %c0_6 = arith.constant 0 : index
    %4 = vector.load %arg3[%c0_5, %c0_6] : memref<8x1xi32, #tpu.memory_space<vmem>>, vector<8x1xi32>
    %5 = arith.sitofp %4 : vector<8x1xi32> to vector<8x1xf32>
    %c0_7 = arith.constant 0 : index
    %c0_8 = arith.constant 0 : index
    %6 = vector.load %arg5[%c0_7, %c0_8] : memref<2x128xf32, #tpu.memory_space<vmem>>, vector<1x128xf32>
    %c1 = arith.constant 1 : index
    %c0_9 = arith.constant 0 : index
    %7 = vector.load %arg5[%c1, %c0_9] : memref<2x128xf32, #tpu.memory_space<vmem>>, vector<1x128xf32>
    %c0_10 = arith.constant 0 : index
    %c0_11 = arith.constant 0 : index
    %8 = vector.load %arg5[%c0_10, %c0_11] : memref<2x128xf32, #tpu.memory_space<vmem>>, vector<1x128xf32>
    %9 = arith.subf %7, %8 : vector<1x128xf32>
    %10 = vector.broadcast %5 : vector<8x1xf32> to vector<8x128xf32>
    %11 = vector.broadcast %9 : vector<1x128xf32> to vector<8x128xf32>
    %12 = arith.mulf %10, %11 : vector<8x128xf32>
    %13 = vector.broadcast %6 : vector<1x128xf32> to vector<8x128xf32>
    %14 = arith.addf %13, %12 : vector<8x128xf32>
    %15 = arith.addf %2, %3 : vector<8x128xf32>
    %16 = arith.addf %15, %14 : vector<8x128xf32>
    %cst = arith.constant dense<0.000000e+00> : vector<8xf32>
    %17 = vector.multi_reduction <add>, %16, %cst [1] : vector<8x128xf32> to vector<8xf32>
    %18 = vector.shape_cast %17 : vector<8xf32> to vector<8x1xf32>
    %cst_12 = arith.constant 7.812500e-03 : f32
    %19 = vector.broadcast %cst_12 : f32 to vector<8x1xf32>
    %20 = arith.mulf %18, %19 : vector<8x1xf32>
    %21 = vector.broadcast %20 : vector<8x1xf32> to vector<8x128xf32>
    %22 = arith.subf %16, %21 : vector<8x128xf32>
    %23 = arith.mulf %22, %22 : vector<8x128xf32>
    %cst_13 = arith.constant dense<0.000000e+00> : vector<8xf32>
    %24 = vector.multi_reduction <add>, %23, %cst_13 [1] : vector<8x128xf32> to vector<8xf32>
    %25 = vector.shape_cast %24 : vector<8xf32> to vector<8x1xf32>
    %cst_14 = arith.constant 7.812500e-03 : f32
    %26 = vector.broadcast %cst_14 : f32 to vector<8x1xf32>
    %27 = arith.mulf %25, %26 : vector<8x1xf32>
    %cst_15 = arith.constant 9.99999974E-6 : f32
    %28 = vector.broadcast %cst_15 : f32 to vector<8x1xf32>
    %29 = arith.addf %27, %28 : vector<8x1xf32>
    %30 = math.rsqrt %29 : vector<8x1xf32>
    %31 = vector.broadcast %30 : vector<8x1xf32> to vector<8x128xf32>
    %32 = arith.mulf %22, %31 : vector<8x128xf32>
    %c0_16 = arith.constant 0 : index
    %c0_17 = arith.constant 0 : index
    %33 = vector.load %arg6[%c0_16, %c0_17] : memref<1x128xf32, #tpu.memory_space<vmem>>, vector<1x128xf32>
    %34 = vector.broadcast %33 : vector<1x128xf32> to vector<8x128xf32>
    %35 = arith.mulf %32, %34 : vector<8x128xf32>
    %c0_18 = arith.constant 0 : index
    %c0_19 = arith.constant 0 : index
    %36 = vector.load %arg7[%c0_18, %c0_19] : memref<1x128xf32, #tpu.memory_space<vmem>>, vector<1x128xf32>
    %37 = vector.broadcast %36 : vector<1x128xf32> to vector<8x128xf32>
    %38 = arith.addf %35, %37 : vector<8x128xf32>
    %c0_20 = arith.constant 0 : index
    %c0_21 = arith.constant 0 : index
    %39 = vector.load %arg8[%c0_20, %c0_21] : memref<8x128xf32, #tpu.memory_space<vmem>>, vector<8x128xf32>
    tpu.vector_store %arg8[%c0_20, %c0_21], %38 {strides = array<i32>} : memref<8x128xf32, #tpu.memory_space<vmem>>, vector<8x128xf32>,
    return
  }
  func.func @transform_0(%arg0: i32, %arg1: memref<16xi32, #tpu.memory_space<smem>>) -> (i32, i32) {
    %c0_i32 = arith.constant 0 : i32
    %c0_i32_0 = arith.constant 0 : i32
    %c0_i32_1 = arith.constant 0 : i32
    return %c0_i32, %c0_i32_0 : i32, i32
  }
  func.func @transform_1(%arg0: i32, %arg1: memref<16xi32, #tpu.memory_space<smem>>) -> (i32, i32) {
    %c0_i32 = arith.constant 0 : i32
    %c0_i32_0 = arith.constant 0 : i32
    return %arg0, %c0_i32 : i32, i32
  }
  func.func @transform_2(%arg0: i32, %arg1: memref<16xi32, #tpu.memory_space<smem>>) -> (i32, i32) {
    %c0_i32 = arith.constant 0 : i32
    %c0_i32_0 = arith.constant 0 : i32
    %c0_i32_1 = arith.constant 0 : i32
    return %c0_i32, %c0_i32_0 : i32, i32
  }
  func.func @transform_3(%arg0: i32, %arg1: memref<16xi32, #tpu.memory_space<smem>>) -> (i32, i32) {
    %c0_i32 = arith.constant 0 : i32
    %c0_i32_0 = arith.constant 0 : i32
    %c0_i32_1 = arith.constant 0 : i32
    return %c0_i32, %c0_i32_0 : i32, i32
  }
  func.func @transform_4(%arg0: i32, %arg1: memref<16xi32, #tpu.memory_space<smem>>) -> (i32, i32) {
    %c0_i32 = arith.constant 0 : i32
    %c0_i32_0 = arith.constant 0 : i32
    %c0_i32_1 = arith.constant 0 : i32
    return %c0_i32, %c0_i32_0 : i32, i32
  }
  func.func @transform_5(%arg0: i32, %arg1: memref<16xi32, #tpu.memory_space<smem>>) -> (i32, i32) {
    %c0_i32 = arith.constant 0 : i32
    %c0_i32_0 = arith.constant 0 : i32
    %c0_i32_1 = arith.constant 0 : i32
    return %c0_i32, %c0_i32_0 : i32, i32
  }
  func.func @transform_6(%arg0: i32, %arg1: memref<16xi32, #tpu.memory_space<smem>>) -> (i32, i32) {
    %c0_i32 = arith.constant 0 : i32
    %c0_i32_0 = arith.constant 0 : i32
    return %arg0, %c0_i32 : i32, i32
  }
}

</mosaic_0001>

<bundles_post_ra>
// kernel: tpu_custom_call.1
= control target key start
LH: loop header
LB: loop body
LE: loop exit
PB: predicated region body
PF: predicated region fallthrough
CT: control target
= control target key end

     0   :  { %s630_s27 = smov [#allocation4]   ;;  %s806_s0 = inlined_call_operand.vmem [shape: s32[16], index: 0, kind: input, shape index: {}]   ;;  %s807_s1 = inlined_call_operand.hbm [shape: f32[512,128], index: 1, kind: input, shape index: {}]   ;;  %s808_s2 = inlined_call_operand.vmem [shape: s32[16,1], index: 2, kind: input, shape index: {}]   ;;  %s809_s3 = inlined_call_operand.vmem [shape: f32[8,128], index: 3, kind: input, shape index: {}]   ;;  %s810_s4 = inlined_call_operand.vmem [shape: f32[2,128], index: 4, kind: input, shape index: {}]   ;;  %s811_s5 = inlined_call_operand.vmem [shape: f32[1,128], index: 5, kind: input, shape index: {}]   ;;  %s812_s6 = inlined_call_operand.vmem [shape: f32[1,128], index: 6, kind: input, shape index: {}]   ;;  %s813_s7 = inlined_call_operand.hbm [shape: f32[16,128], index: 7, kind: output, shape index: {}]  }
   0x1   :  { %s13_s26 = sshll.u32 %s806_s0, 4  ;;  %s14_s26 = int_to_ptr.vmem [resolvable:$true] %s13_s26 }
   0x2   :  { %16 = dma.vmem_to_smem %s14_s26, 16, %s630_s27, [#allocation3] }
   0x3   :  { %600 = dma.done.wait [#allocation3], 16 }
   0x4   :  { %601 = vsyncadd [#allocation3], 4294967280 }
   0x5   :  { %19 = sfence }
   0x6   :  { %20 = vsyncpa [#allocation6], 0 }
   0x7   :  { %21 = vsyncpa [#allocation7], 0 }
   0x8   :  { %23 = vsyncpa [#allocation7 + $0x1], 0  ;;  %s678_s28 = smov 0   ;;  %s680_s29 = smov 0  }
   0x9   :  { %s682_s30 = smov 0   ;;  %s684_s8 = smov 0  }
   0xa LB: > { %s699_s0 = sadd.s32 4294967295, %s624_s8   ;;  %s429_s9 = sadd.s32 4294967294, %s624_s8   ;;  %s624_s8 = sphi %s684_s8, %s819_s8   ;;  %s620_s30 = sphi %s682_s30, %s818_s30   ;;  %s616_s29 = sphi %s680_s29, %s817_s29   ;;  %s612_s28 = sphi %s678_s28, %s816_s28  }
   0xb   : > { %s703_s10 = sadd.s32 1, %s624_s8   ;;  %s167_s11 = sadd.s32 1, %s620_s30 }
   0xc   : > { %s164_s12 = ssub.s32 %s624_s8, %s703_s10  ;;  %p177_p0 = scmp.ne.s32.totalorder %s620_s30, %s616_s29 }
   0xd   : > { %p165_p1 = scmp.eq.s32.totalorder %s164_s12, 0  ;;  %p178_p2 = scmp.eq.s32.totalorder %s699_s0, 1 }
   0xe   : > { %p183_p3 = scmp.ne.s32.totalorder %s616_s29, %s612_s28  ;;  %p184_p4 = scmp.eq.s32.totalorder %s429_s9, 1 }
   0xf   : > { %s714_s13 = scalar_select %p165_p1, %s620_s30, %s167_s11  }
  0x10   : > { %p716_p5 = por %p178_p2, %p177_p0  ;;  %p720_p6 = por %p184_p4, %p183_p3 }
  0x11   : > { %p430_p7 = scmp.ge.s32.totalorder %s624_s8, 1  ;;  %p191_p8 = scmp.lt.s32.totalorder %s624_s8, 3 }
  0x12   : > { %p456_p9 = scmp.eq.s32.totalorder %s699_s0, 0  ;;  %s202_s18 = sshll.u32 %s807_s1, 4  ;;  %s203_s18 = int_to_ptr.hbm [resolvable:$true] %s202_s18 }
  0x13   : > { %p192_p10 = pnand %p430_p7, %p191_p8  ;;  %s631_s19 = smov [#allocation5]  }
  0x14   : > { %s204_s20 = sshll.u32 %s631_s19, 4  ;;  %s632_s21 = smov 128   ;;  %s205_s20 = int_to_ptr.vmem [resolvable:$true] %s204_s20 }
  0x15   : > { %p448_p11 = pneg %p192_p10  ;;  %s633_s22 = smov 8  }
  0x16   : > { %239 = sbr.rel (%p192_p10) target bundleno = 430 (0x1ae), region = 44 }
  0x17   : > { %p449_p12 = pnand %p456_p9, %p448_p11 }
  0x19   : > { %451 = dma.hbm_to_vmem [thread:$0]  (!%p449_p12), %s203_s18, 8192, %s205_s20, [#allocation6], %s632_s21, %s632_s21, %s633_s22  }
  0x1b   : > { %603 = dma.done.wait (%p456_p9), [#allocation6], 8192  }
  0x1c   : > { %605 = vsyncadd (%p456_p9), [#allocation6], 4294959104  ;;  %s266_s23 = sand.u32 1, %s616_s29   ;;  %p269_p13 = scmp.lt.s32.totalorder %s699_s0, 1 }
  0x1d   : > { %s740_s24 = sshll.u32 %s266_s23, 3  ;;  %s437_s25 = sshll.u32 %s699_s0, 3 }
  0x1e   : > { %s270_s26 = scalar_select %p269_p13, %s699_s0, 1 }
  0x1f   : > { %s268_s16 = scalar_lea.vmem [#allocation8], %s740_s24  ;;  %s626_s17 = smov 0  }
  0x20   : > { %s436_s27 = sshll.u32 %s270_s26, 3 }
  0x21   : > { %s272_s12 = scalar_lea.vmem %s808_s2, %s436_s27 }
  0x22 LB: >> { %s280_s18 = sadd.s32 %s628_s17, %s437_s25  ;;  %s284_s21 = scalar_lea.vmem [#allocation2], %s628_s17  ;;  %s628_s17 = sphi %s626_s17, %s279_s17  }
  0x23   : >> { %s281_s19 = sld [smem:[#allocation4 + %s280_s18]]  ;;  %s279_s17 = sadd.s32 1, %s628_s17  }
  0x24   : >> { %p276_p0 = scmp.ge.s32.totalorder %s279_s17, 8  }
  0x25   : > { %v288_v1 = vld [vmem:[%s272_s12] sm:$0xff] (%p276_p0)  ;;  %v634_v2 = vmov (%p276_p0), 0   ;;  %s346_s26 = scalar_lea.hbm (%p276_p0), %s813_s7, %s437_s25  ;;  %s348_s11 = sshll.u32 (%p276_p0), %s268_s16, 4  ;;  %s349_s11 = int_to_ptr.vmem [resolvable:$true] %s348_s11 }
  0x26   : > { %504 = vset.pattern.permute.xlu0 (%p276_p0), %v634_v2  ;;  %v289_v3 = vcvt.s32.f32 (%p276_p0), %v288_v1  ;;  %v290_v4 = vld [vmem:[%s810_s4] sm:$0x1] (%p276_p0)  ;;  %v291_v5 = vld [vmem:[%s810_s4 + $0x1] sm:$0x1] (%p276_p0)  ;;  %s350_s18 = sshll.u32 (%p276_p0), %s346_s26, 4  ;;  %s336_s0 = scalar_lea.sflag (%p276_p0), [#allocation7], %s266_s23  ;;  %s351_s18 = int_to_ptr.hbm [resolvable:$true] %s350_s18 }
  0x27   : > { %278 = sbr.rel (!%p276_p0) target bundleno = 34 (0x22), region = 93  ;;  %v292_v6 = vsub.f32 (%p276_p0), %v291_v5, %v290_v4  ;;  %v287_v9 = vld [vmem:[%s809_s3] sm:$0xff] (%p276_p0)  ;;  %s566_s12 = sshra.s32 (%p276_p0), %s351_s18, 4  ;;  %s567_s12 = int_to_ptr.hbm [resolvable:$true] %s566_s12 }
  0x28   : > { %295 = vperm.xlu0 (%p276_p0), %504, %v289_v3   ;;  %v505_v10 = vld [vmem:[%s810_s4] ss:$0 sm:$0xff] (%p276_p0)  ;;  %s568_s25 = scalar_lea.hbm (%p276_p0), %s567_s12, 8  ;;  %p573_p4 = scmp.lt.s32.totalorder (%p276_p0), %s567_s12, %s813_s7 }
  0x29   : >> { %s282_s20 = scalar_lea.vmem [#allocation5], %s281_s19  ;;  %v298_v7 = vperm.slane (%p276_p0), %v292_v6, 0  ;;  %v506_v29 = vld [vmem:[%s811_s5] ss:$0 sm:$0xff] (%p276_p0)  ;;  %p569_p1 = scmp.ne.s32.totalorder (%p276_p0), %s567_s12, %s568_s25 }
  0x2a   : >> { %v283_v0 = vld [vmem:[%s282_s20] sm:$0x1]  ;;  %s572_s20 = scalar_lea.hbm (%p276_p0), %s813_s7, 16 }
  0x2b   : >> { %285 = vst [vmem:[%s284_s21] sm:$0x1] %v283_v0  ;;  %v507_v32 = vld [vmem:[%s812_s6] ss:$0 sm:$0xff] (%p276_p0)  ;;  %p570_p2 = pnand (%p276_p0), %p569_p1, %p716_p5  ;;  %p574_p7 = scmp.lt.s32.totalorder (%p276_p0), %s572_s20, %s568_s25 }
  0x2d   : > { %p571_p3 = pneg %p570_p2  ;;  %p575_p8 = por %p574_p7, %p573_p4 }
  0x2f   : > { %p576_p9 = pnand %p575_p8, %p571_p3 }
  0x32   : > { %v286_v8 = vld [vmem:[#allocation2] sm:$0xff] }
  0x33   : > { %v302_v13 = vadd.f32 %v287_v9, %v286_v8 }
  0x9a   : > { %v296_v11 = vpop.permute.xlu0 %295 }
  0x9b   : > { %v299_v12 = vmul.f32 %v298_v7, %v296_v11 }
  0x9d   : > { %v301_v14 = vadd.f32 %v505_v10, %v299_v12 }
  0x9f   : > { %v303_v15 = vadd.f32 %v302_v13, %v301_v14 }
  0xa1   : > { %304 = vadd.xlane.f32.xlu0 %v303_v15 }
 0x114   : > { %v305_v16 = vpop.xlane.xlu0 %304 }
 0x115   : > { %v306_v17 = vmul.f32 0.0078125, %v305_v16 }
 0x117   : > { %v307_v18 = vsub.f32 %v303_v15, %v306_v17 }
 0x119   : > { %v308_v19 = vmul.f32 %v307_v18, %v307_v18 }
 0x11b   : > { %309 = vadd.xlane.f32.xlu1 %v308_v19 }
 0x18e   : > { %v310_v20 = vpop.xlane.xlu1 %309 }
 0x18f   : > { %v311_v21 = vmul.f32 0.0078125, %v310_v20 }
 0x191   : > { %v312_v22 = vadd.f32 1e-05, %v311_v21 }
 0x193   : > { %508 = vrsqrt.f32 %v312_v22  ;;  %vm319_vm1 = vweird.f32 %v312_v22 }
 0x199   : > { %v509_v23 = vpop.eup %508 }
 0x19a   : > { %v314_v24 = vmul.f32 %v509_v23, %v312_v22  ;;  %vm320_vm0 = vweird.f32 %v509_v23 }
 0x19b   : > { %vm321_vm2 = vmor %vm319_vm1, %vm320_vm0 }
 0x19c   : > { %v315_v25 = vmul.f32 %v509_v23, %v314_v24 }
 0x19e   : > { %v316_v26 = vmul.f32 0.5, %v315_v25 }
 0x1a0   : > { %v317_v27 = vsub.f32 1.5, %v316_v26 }
 0x1a2   : > { %v318_v28 = vmul.f32 %v509_v23, %v317_v27 }
 0x1a4   : > { %v322_v30 = vsel %vm321_vm2, %v509_v23, %v318_v28 }
 0x1a5   : > { %v323_v31 = vmul.f32 %v322_v30, %v307_v18 }
 0x1a7   : > { %v328_v33 = vmul.f32 %v506_v29, %v323_v31 }
 0x1a9   : > { %v333_v34 = vadd.f32 %v507_v32, %v328_v33 }
 0x1ab   : > { %334 = vst [vmem:[%s268_s16] sm:$0xff] %v333_v34 }
 0x1ac   : > { %579 = shalt.err (!%p576_p9)
}
 0x1ad   : > { %446 = dma.vmem_to_hbm [thread:$0]  (%p716_p5), %s349_s11, 128, %s351_s18, %s336_s0  }
 0x1ae PF: > { %p458_p10 = scmp.ge.s32.totalorder %s624_s8, 2  ;;  %s362_s23 = sand.u32 1, %s612_s28  }
 0x1af   : > { %s363_s24 = scalar_lea.sflag [#allocation7], %s362_s23 }
 0x1b0   : > { %p453_p11 = pnand %p458_p10, %p720_p6 }
 0x1b2   : > { %p454_p12 = pneg %p453_p11 }
 0x1b4   : > { %607 = dma.done.wait (%p454_p12), %s363_s24, 128  }
 0x1b5   : > { %609 = vsyncadd (%p454_p12), %s363_s24, 4294967168  ;;  %p26_p13 = scmp.ge.s32.totalorder %s703_s10, 4   ;;  %s816_s28 = smov %s616_s29 }
 0x1b6   : > { %s817_s29 = smov %s620_s30  ;;  %s818_s30 = smov %s714_s13 }
 0x1b7   : > { %s819_s8 = smov %s703_s10  ;;  %28 = sbr.rel (!%p26_p13) target bundleno = 10 (0xa), region = 104 }
 0x1bc   :  { %369 = vsyncpa [#allocation6], 1 }
 0x1bd   :  { %371 = vsyncpa [#allocation6 + $0x1], 1 }
 0x1be   :  { %372 = vsyncpa [#allocation7], 1 }
 0x1bf   :  { %374 = vsyncpa [#allocation7 + $0x1], 1 }

</bundles_post_ra>
